<compile_context>
chip_gen: v7x
topology: tpu7x:2x2x1
jax: 0.10.0
libtpu: 0.0.40
codegen_flags: <defaults>
</compile_context>

<pallas_src>
import functools

import jax
import jax.numpy as jnp
from jax.experimental import pallas as pl
from jax.experimental.pallas import tpu as pltpu


# ---------------------------------------------------------------------------
# Fused single-pass kernel (used when the whole (C, HW) slab is small).
# ---------------------------------------------------------------------------
def _fused_kernel(x_ref, w1_ref, b1_ref, w2_ref, b2_ref, o_ref):
    x = x_ref[0]                                               # (C, HW), input dtype
    # Pooling accumulation in f32 (unbiased mean even for low-precision x).
    pooled = jnp.mean(x.astype(jnp.float32), axis=1, keepdims=True)   # (C, 1)

    h = jnp.dot(w1_ref[...], pooled,
                preferred_element_type=jnp.float32) + b1_ref[...]     # (Cr, 1)
    h = jnp.maximum(h, 0.0)
    s = jnp.dot(w2_ref[...], h,
                preferred_element_type=jnp.float32) + b2_ref[...]     # (C, 1)
    s = jax.nn.sigmoid(s)

    # Scale in the input dtype (no full-tile f32 temporary).
    o_ref[0] = (x * s.astype(x.dtype)).astype(o_ref.dtype)


# ---------------------------------------------------------------------------
# Two-pass (tiled) kernels.
# ---------------------------------------------------------------------------
def _pool_kernel(x_ref, sum_ref, *, hw_total, hw_tile):
    """Accumulate per-channel spatial sums over HW tiles (f32)."""
    t = pl.program_id(1)

    @pl.when(t == 0)
    def _():
        sum_ref[...] = jnp.zeros_like(sum_ref)

    x = x_ref[0].astype(jnp.float32)                           # (C, hw_tile)
    if hw_total % hw_tile != 0:
        # Partial last tile: zero out lanes past the true spatial extent so
        # the mean divides by HW, not the padded tile count.
        col = jax.lax.broadcasted_iota(jnp.int32, x.shape, 1) + t * hw_tile
        x = jnp.where(col < hw_total, x, 0.0)

    sum_ref[0] += jnp.sum(x, axis=1, keepdims=True)            # (C, 1)


def _scale_kernel(x_ref, s_ref, o_ref):
    """Pure streaming pass: out = x * s (s broadcast over the spatial lanes)."""
    x = x_ref[0]                                               # (C, hw_tile)
    s = s_ref[0].astype(x.dtype)                               # (C, 1)
    o_ref[0] = (x * s).astype(o_ref.dtype)


# ---------------------------------------------------------------------------
# Wrappers.
# ---------------------------------------------------------------------------
def _choose_hw_tile(hw, c, elem_bytes, max_block_bytes=2 * 1024 * 1024):
    """Lane-dense HW tile (multiple of 128) with a capped per-block footprint.

    2 MiB blocks keep 2-in + 2-out double-buffered blocks at ~8 MiB, well
    inside the scoped-VMEM default of every TPU generation (incl. v7x).
    """
    max_tile = max(128, (max_block_bytes // (c * elem_bytes)) // 128 * 128)
    if hw <= max_tile:
        return hw                       # block == full dim is always legal
    return max_tile


def _fused_call(x_flat, w1, b1, w2, b2, vmem_limit_bytes):
    N, C, HW = x_flat.shape
    Cr = w1.shape[0]
    dtype = x_flat.dtype
    itemsize = jnp.dtype(dtype).itemsize

    cost = pl.CostEstimate(
        flops=int(N * (2 * C * HW + 4 * C * Cr)),
        transcendentals=int(N * C),
        bytes_accessed=int(2 * N * C * HW * itemsize),
    )

    return pl.pallas_call(
        _fused_kernel,
        out_shape=jax.ShapeDtypeStruct((N, C, HW), dtype),
        grid_spec=pltpu.PrefetchScalarGridSpec(
            num_scalar_prefetch=0,
            grid=(N,),
            in_specs=[
                pl.BlockSpec((1, C, HW), lambda b: (b, 0, 0)),   # x
                pl.BlockSpec((Cr, C),    lambda b: (0, 0)),      # w1
                pl.BlockSpec((Cr, 1),    lambda b: (0, 0)),      # b1
                pl.BlockSpec((C, Cr),    lambda b: (0, 0)),      # w2
                pl.BlockSpec((C, 1),     lambda b: (0, 0)),      # b2
            ],
            out_specs=pl.BlockSpec((1, C, HW), lambda b: (b, 0, 0)),
        ),
        compiler_params=pltpu.CompilerParams(
            dimension_semantics=("parallel",),
            vmem_limit_bytes=vmem_limit_bytes),
        cost_estimate=cost,
    )(x_flat, w1, b1.reshape(Cr, 1), w2, b2.reshape(C, 1))


def _two_pass_call(x_flat, w1, b1, w2, b2, vmem_limit_bytes, hw_tile_override):
    N, C, HW = x_flat.shape
    dtype = x_flat.dtype
    itemsize = jnp.dtype(dtype).itemsize

    if hw_tile_override is not None:
        assert hw_tile_override == HW or hw_tile_override % 128 == 0
        hw_tile = min(hw_tile_override, HW)
    else:
        hw_tile = _choose_hw_tile(HW, C, itemsize)
    n_tiles = pl.cdiv(HW, hw_tile)

    # ---- Pass 1: per-channel spatial sums (f32 accumulation) ----------------
    pool_cost = pl.CostEstimate(
        flops=int(N * C * HW),
        transcendentals=0,
        bytes_accessed=int(N * C * HW * itemsize + N * C * 4),
    )
    sums = pl.pallas_call(
        functools.partial(_pool_kernel, hw_total=HW, hw_tile=hw_tile),
        out_shape=jax.ShapeDtypeStruct((N, C, 1), jnp.float32),
        grid_spec=pltpu.PrefetchScalarGridSpec(
            num_scalar_prefetch=0,
            grid=(N, n_tiles),
            in_specs=[pl.BlockSpec((1, C, hw_tile), lambda b, t: (b, 0, t))],
            out_specs=pl.BlockSpec((1, C, 1), lambda b, t: (b, 0, 0)),
        ),
        compiler_params=pltpu.CompilerParams(
            dimension_semantics=("parallel", "arbitrary"),
            vmem_limit_bytes=vmem_limit_bytes),
        cost_estimate=pool_cost,
    )(x_flat)

    # ---- SE MLP on the pooled matrix: tiny, done in plain JAX ---------------
    pooled = sums[..., 0] / HW                                   # (N, C) f32
    h = jnp.maximum(pooled @ w1.T + b1, 0.0)                     # (N, Cr)
    s = jax.nn.sigmoid(h @ w2.T + b2)                            # (N, C)
    s = s[..., None]                                             # (N, C, 1)

    # ---- Pass 2: streaming scale pass ---------------------------------------
    scale_cost = pl.CostEstimate(
        flops=int(N * C * HW),
        transcendentals=0,
        bytes_accessed=int(2 * N * C * HW * itemsize),
    )
    out_flat = pl.pallas_call(
        _scale_kernel,
        out_shape=jax.ShapeDtypeStruct((N, C, HW), dtype),
        grid_spec=pltpu.PrefetchScalarGridSpec(
            num_scalar_prefetch=0,
            grid=(N, n_tiles),
            in_specs=[
                pl.BlockSpec((1, C, hw_tile), lambda b, t: (b, 0, t)),  # x
                pl.BlockSpec((1, C, 1),       lambda b, t: (b, 0, 0)),  # s
            ],
            out_specs=pl.BlockSpec((1, C, hw_tile), lambda b, t: (b, 0, t)),
        ),
        compiler_params=pltpu.CompilerParams(
            dimension_semantics=("parallel", "parallel"),
            vmem_limit_bytes=vmem_limit_bytes),
        cost_estimate=scale_cost,
    )(x_flat, s)
    return out_flat


def channel_attention(x_nchw, w1, b1, w2, b2, *,
                      force_two_pass=False,
                      hw_tile_override=None,
                      vmem_limit_bytes=32 * 1024 * 1024):
    """SE channel attention: x * sigmoid(W2 @ relu(W1 @ mean_HW(x) + b1) + b2).

    x_nchw: (N, C, H, W).  w1: (C//r, C), b1: (C//r,), w2: (C, C//r), b2: (C,).
    """
    N, C, H, W = x_nchw.shape
    HW = H * W
    itemsize = jnp.dtype(x_nchw.dtype).itemsize
    x_flat = x_nchw.reshape(N, C, HW)

    # Fused single pass only while 2-in + 2-out double-buffered slabs stay
    # comfortably inside the portable scoped-VMEM budget (safe on v5e/v6e/v7x).
    fused_ok = (C * HW * itemsize) <= 3 * 1024 * 1024

    # TODO(synk): for genuinely tiny HW (< 128 lanes) one could additionally
    # pack several batch elements per block to keep the stored lane width
    # >= 512; not needed for realistic SR feature maps.

    if fused_ok and not force_two_pass:
        out_flat = _fused_call(x_flat, w1, b1, w2, b2, vmem_limit_bytes)
    else:
        out_flat = _two_pass_call(x_flat, w1, b1, w2, b2,
                                  vmem_limit_bytes, hw_tile_override)
    return out_flat.reshape(N, C, H, W)


def reference(x, w1, b1, w2, b2):
    """Pure-JAX reference (matches the PyTorch ChannelAttention forward)."""
    pooled = jnp.mean(x, axis=(2, 3))                            # (N, C)
    h = jnp.maximum(pooled @ w1.T + b1, 0.0)                     # (N, C//r)
    s = jax.nn.sigmoid(h @ w2.T + b2)                            # (N, C)
    return x * s[:, :, None, None]


if __name__ == "__main__":
    # ChannelAttention defaults: num_features=64, reduction=4 -> C=64, Cr=16
    N, C = 2, 64
    Cr = C // 4

    key = jax.random.PRNGKey(0)
    kx, k1, k2, k3, k4, kx2 = jax.random.split(key, 6)

    w1 = 0.1 * jax.random.normal(k1, (Cr, C), dtype=jnp.float32)   # 1x1 conv1 weight
    b1 = 0.1 * jax.random.normal(k2, (Cr,),   dtype=jnp.float32)   # conv1 bias
    w2 = 0.1 * jax.random.normal(k3, (C, Cr), dtype=jnp.float32)   # 1x1 conv2 weight
    b2 = 0.1 * jax.random.normal(k4, (C,),    dtype=jnp.float32)   # conv2 bias

    # Case 1: small image -> fused single-pass path.
    x = jax.random.normal(kx, (N, C, 8, 8), dtype=jnp.float32)
    out = jax.block_until_ready(channel_attention(x, w1, b1, w2, b2))
    ref = reference(x, w1, b1, w2, b2)
    assert out.shape == x.shape
    assert jnp.allclose(out, ref, atol=1e-5, rtol=1e-5), "fused path mismatch"

    # Case 2: same input forced through the tiled two-pass streaming path.
    out2 = jax.block_until_ready(
        channel_attention(x, w1, b1, w2, b2, force_two_pass=True))
    assert jnp.allclose(out2, ref, atol=1e-5, rtol=1e-5), "two-pass mismatch"

    # Case 3: spatial extent not a multiple of the HW tile -> exercises the
    # partial-tile masking in the pooling pass and the edge-block store.
    x3 = jax.random.normal(kx2, (N, C, 20, 20), dtype=jnp.float32)   # HW=400
    out3 = jax.block_until_ready(
        channel_attention(x3, w1, b1, w2, b2,
                          force_two_pass=True, hw_tile_override=128))
    ref3 = reference(x3, w1, b1, w2, b2)
    assert jnp.allclose(out3, ref3, atol=1e-5, rtol=1e-5), "partial-tile mismatch"

    print("KERNEL_OK")
</pallas_src>

<mosaic_0001>
module attributes {stable_mosaic.version = 11 : i64} {
  func.func @_fused_kernel(%arg0: i32, %arg1: memref<1x64x64xf32, #tpu.memory_space<vmem>>, %arg2: memref<16x64xf32, #tpu.memory_space<vmem>>, %arg3: memref<16x1xf32, #tpu.memory_space<vmem>>, %arg4: memref<64x16xf32, #tpu.memory_space<vmem>>, %arg5: memref<64x1xf32, #tpu.memory_space<vmem>>, %arg6: memref<1x64x64xf32, #tpu.memory_space<vmem>>) attributes {dimension_semantics = [#tpu.dimension_semantics<parallel>], iteration_bounds = array<i64: 2>, scalar_prefetch = 0 : i64, scratch_operands = 0 : i64, tpu.core_type = #tpu.core_type<tc>, window_params = [{transform_indices = @transform_0, window_bounds = array<i64: 1, 64, 64>}, {pipeline_mode = #tpu.pipeline_mode<synchronous>, transform_indices = @transform_1, window_bounds = array<i64: 16, 64>}, {pipeline_mode = #tpu.pipeline_mode<synchronous>, transform_indices = @transform_2, window_bounds = array<i64: 16, 1>}, {pipeline_mode = #tpu.pipeline_mode<synchronous>, transform_indices = @transform_3, window_bounds = array<i64: 64, 16>}, {pipeline_mode = #tpu.pipeline_mode<synchronous>, transform_indices = @transform_4, window_bounds = array<i64: 64, 1>}, {transform_indices = @transform_5, window_bounds = array<i64: 1, 64, 64>}]} {
    %c0 = arith.constant 0 : index
    %c0_0 = arith.constant 0 : index
    %c0_1 = arith.constant 0 : index
    %0 = vector.load %arg1[%c0, %c0_0, %c0_1] : memref<1x64x64xf32, #tpu.memory_space<vmem>>, vector<1x64x64xf32>
    %1 = vector.shape_cast %0 : vector<1x64x64xf32> to vector<64x64xf32>
    %cst = arith.constant dense<0.000000e+00> : vector<64xf32>
    %2 = vector.multi_reduction <add>, %1, %cst [1] : vector<64x64xf32> to vector<64xf32>
    %3 = vector.shape_cast %2 : vector<64xf32> to vector<64x1xf32>
    %cst_2 = arith.constant 6.400000e+01 : f32
    %4 = vector.broadcast %cst_2 : f32 to vector<64x1xf32>
    %5 = arith.divf %3, %4 : vector<64x1xf32>
    %c0_3 = arith.constant 0 : index
    %c0_4 = arith.constant 0 : index
    %6 = vector.load %arg2[%c0_3, %c0_4] : memref<16x64xf32, #tpu.memory_space<vmem>>, vector<16x64xf32>
    %cst_5 = arith.constant dense<0.000000e+00> : vector<16x1xf32>
    %7 = tpu.matmul %6, %5, %cst_5 {dimension_numbers = #tpu.dot_dimension_numbers<[1], [0], [0], [1], [0, 0, 1, 1], [], []>} : vector<16x64xf32>, vector<64x1xf32>, vector<16x1xf32> -> vector<16x1xf32>
    %c0_6 = arith.constant 0 : index
    %c0_7 = arith.constant 0 : index
    %8 = vector.load %arg3[%c0_6, %c0_7] : memref<16x1xf32, #tpu.memory_space<vmem>>, vector<16x1xf32>
    %9 = arith.addf %7, %8 : vector<16x1xf32>
    %cst_8 = arith.constant 0.000000e+00 : f32
    %10 = vector.broadcast %cst_8 : f32 to vector<16x1xf32>
    %11 = arith.maximumf %9, %10 : vector<16x1xf32>
    %c0_9 = arith.constant 0 : index
    %c0_10 = arith.constant 0 : index
    %12 = vector.load %arg4[%c0_9, %c0_10] : memref<64x16xf32, #tpu.memory_space<vmem>>, vector<64x16xf32>
    %cst_11 = arith.constant dense<0.000000e+00> : vector<64x1xf32>
    %13 = tpu.matmul %12, %11, %cst_11 {dimension_numbers = #tpu.dot_dimension_numbers<[1], [0], [0], [1], [0, 0, 1, 1], [], []>} : vector<64x16xf32>, vector<16x1xf32>, vector<64x1xf32> -> vector<64x1xf32>
    %c0_12 = arith.constant 0 : index
    %c0_13 = arith.constant 0 : index
    %14 = vector.load %arg5[%c0_12, %c0_13] : memref<64x1xf32, #tpu.memory_space<vmem>>, vector<64x1xf32>
    %15 = arith.addf %13, %14 : vector<64x1xf32>
    %16 = arith.negf %15 : vector<64x1xf32>
    %17 = math.exp %16 : vector<64x1xf32>
    %cst_14 = arith.constant 1.000000e+00 : f32
    %18 = vector.broadcast %cst_14 : f32 to vector<64x1xf32>
    %19 = arith.addf %18, %17 : vector<64x1xf32>
    %20 = arith.divf %18, %19 : vector<64x1xf32>
    %21 = vector.broadcast %20 : vector<64x1xf32> to vector<64x64xf32>
    %22 = arith.mulf %1, %21 : vector<64x64xf32>
    %c0_15 = arith.constant 0 : index
    %c0_16 = arith.constant 0 : index
    %c0_17 = arith.constant 0 : index
    %23 = vector.load %arg6[%c0_15, %c0_16, %c0_17] : memref<1x64x64xf32, #tpu.memory_space<vmem>>, vector<1x64x64xf32>
    %24 = vector.shape_cast %23 : vector<1x64x64xf32> to vector<64x64xf32>
    %25 = vector.shape_cast %22 : vector<64x64xf32> to vector<1x64x64xf32>
    tpu.vector_store %arg6[%c0_15, %c0_16, %c0_17], %25 {strides = array<i32>} : memref<1x64x64xf32, #tpu.memory_space<vmem>>, vector<1x64x64xf32>,
    return
  }
  func.func @transform_0(%arg0: i32) -> (i32, i32, i32) {
    %c0_i32 = arith.constant 0 : i32
    %c0_i32_0 = arith.constant 0 : i32
    %c0_i32_1 = arith.constant 0 : i32
    return %arg0, %c0_i32, %c0_i32_0 : i32, i32, i32
  }
  func.func @transform_1(%arg0: i32) -> (i32, i32) {
    %c0_i32 = arith.constant 0 : i32
    %c0_i32_0 = arith.constant 0 : i32
    %c0_i32_1 = arith.constant 0 : i32
    return %c0_i32, %c0_i32_0 : i32, i32
  }
  func.func @transform_2(%arg0: i32) -> (i32, i32) {
    %c0_i32 = arith.constant 0 : i32
    %c0_i32_0 = arith.constant 0 : i32
    %c0_i32_1 = arith.constant 0 : i32
    return %c0_i32, %c0_i32_0 : i32, i32
  }
  func.func @transform_3(%arg0: i32) -> (i32, i32) {
    %c0_i32 = arith.constant 0 : i32
    %c0_i32_0 = arith.constant 0 : i32
    %c0_i32_1 = arith.constant 0 : i32
    return %c0_i32, %c0_i32_0 : i32, i32
  }
  func.func @transform_4(%arg0: i32) -> (i32, i32) {
    %c0_i32 = arith.constant 0 : i32
    %c0_i32_0 = arith.constant 0 : i32
    %c0_i32_1 = arith.constant 0 : i32
    return %c0_i32, %c0_i32_0 : i32, i32
  }
  func.func @transform_5(%arg0: i32) -> (i32, i32, i32) {
    %c0_i32 = arith.constant 0 : i32
    %c0_i32_0 = arith.constant 0 : i32
    %c0_i32_1 = arith.constant 0 : i32
    return %arg0, %c0_i32, %c0_i32_0 : i32, i32, i32
  }
}

</mosaic_0001>

<bundles_post_ra>
// kernel: tpu_custom_call.1
= control target key start
LH: loop header
LB: loop body
LE: loop exit
PB: predicated region body
PF: predicated region fallthrough
CT: control target
= control target key end

     0   :  { %10 = vsyncpa [#allocation3], 0  ;;  %s1184_s0 = inlined_call_operand.vmem [shape: f32[2,64,64], index: 0, kind: input, shape index: {}]   ;;  %s1185_s1 = inlined_call_operand.vmem [shape: f32[16,64], index: 1, kind: input, shape index: {}]   ;;  %s1186_s2 = inlined_call_operand.vmem [shape: f32[16,1], index: 2, kind: input, shape index: {}]   ;;  %s1187_s3 = inlined_call_operand.vmem [shape: f32[64,16], index: 3, kind: input, shape index: {}]   ;;  %s1188_s4 = inlined_call_operand.vmem [shape: f32[64,1], index: 4, kind: input, shape index: {}]   ;;  %s1189_s5 = inlined_call_operand.hbm [shape: f32[2,64,64], index: 5, kind: output, shape index: {}]  }
   0x1   :  { %12 = vsyncpa [#allocation3 + $0x1], 0  ;;  %s959_s18 = smov 0   ;;  %s961_s19 = smov 0  }
   0x2   :  { %s963_s20 = smov 0   ;;  %s965_s21 = smov 0  }
   0x3 LB: > { %s980_s22 = sadd.s32 4294967295, %s923_s21   ;;  %s678_s23 = sadd.s32 4294967294, %s923_s21   ;;  %s923_s21 = sphi %s965_s21, %s1195_s21   ;;  %s919_s20 = sphi %s963_s20, %s1194_s20   ;;  %s915_s19 = sphi %s961_s19, %s1193_s19   ;;  %s911_s18 = sphi %s959_s18, %s1192_s18  }
   0x4   : > { %s984_s24 = sadd.s32 1, %s923_s21   ;;  %s135_s25 = sadd.s32 1, %s919_s20 }
   0x5   : > { %s132_s26 = ssub.s32 %s923_s21, %s984_s24  ;;  %p145_p0 = scmp.ne.s32.totalorder %s919_s20, %s915_s19 }
   0x6   : > { %p133_p1 = scmp.eq.s32.totalorder %s132_s26, 0  ;;  %p146_p2 = scmp.eq.s32.totalorder %s980_s22, 1 }
   0x7   : > { %p151_p3 = scmp.ne.s32.totalorder %s915_s19, %s911_s18  ;;  %p152_p4 = scmp.eq.s32.totalorder %s678_s23, 1 }
   0x8   : > { %s995_s27 = scalar_select %p133_p1, %s919_s20, %s135_s25  }
   0x9   : > { %p997_p5 = por %p146_p2, %p145_p0  ;;  %p1001_p6 = por %p152_p4, %p151_p3 }
   0xa   : > { %p681_p7 = scmp.ge.s32.totalorder %s923_s21, 1  ;;  %p190_p8 = scmp.lt.s32.totalorder %s923_s21, 3 }
   0xc   : > { %p191_p9 = pnand %p681_p7, %p190_p8 }
   0xd   : > { %p218_p10 = scmp.lt.s32.totalorder (!%p191_p9), %s980_s22, 1  ;;  %vm231_vm0 = vcmask (!%p191_p9), 523264   ;;  %v265_v16 = vld [vmem:[%s1185_s1] sm:$0xff] (!%p191_p9)  ;;  %v266_v37 = vld [vmem:[%s1185_s1 + $0x8] sm:$0xff] (!%p191_p9)  ;;  %vm368_vm1 = vcmask (!%p191_p9), 130048   ;;  %v354_v49 = vld [vmem:[%s1187_s3 + $0x10] sm:$0xff] (!%p191_p9) }
   0xe   : > { %194 = sbr.rel (%p191_p9) target bundleno = 825 (0x339), region = 40  ;;  %746 = vmatprep.mubr.msk.f32.mxu0 (!%p191_p9), %vm231_vm0, %v265_v16  ;;  %v352_v38 = vld [vmem:[%s1187_s3] sm:$0xff] (!%p191_p9)  ;;  %v268_v39 = vld [vmem:[%s1186_s2 + $0x8] sm:$0xff] (!%p191_p9)  ;;  %v355_v50 = vld [vmem:[%s1187_s3 + $0x18] sm:$0xff] (!%p191_p9)  ;;  %v925_v55 = vmov (!%p191_p9), 0   ;;  %s215_s23 = sand.u32 (!%p191_p9), 1, %s915_s19  }
   0xf   : > { %753 = vmatprep.mubr.msk.f32.mxu1 (!%p191_p9), %vm368_vm1, %v352_v38  ;;  %v267_v40 = vld [vmem:[%s1186_s2] sm:$0xff] (!%p191_p9)  ;;  %v353_v48 = vld [vmem:[%s1187_s3 + $0x8] sm:$0xff] (!%p191_p9)  ;;  %v358_v53 = vld [vmem:[%s1187_s3 + $0x30] sm:$0xff] (!%p191_p9)  ;;  %828 = vset.pattern.permute.xlu1 (!%p191_p9), %v925_v55  ;;  %s682_s25 = sshll.u32 (!%p191_p9), %s215_s23, 6  ;;  %s926_s11 = smov (!%p191_p9), [#allocation2]  }
  0x10   : > { %v356_v51 = vld [vmem:[%s1187_s3 + $0x20] sm:$0xff] (!%p191_p9)  ;;  %v357_v52 = vld [vmem:[%s1187_s3 + $0x28] sm:$0xff] (!%p191_p9)  ;;  %v359_v54 = vld [vmem:[%s1187_s3 + $0x38] sm:$0xff] (!%p191_p9)  ;;  %827 = vset.pattern.permute.xlu0 (!%p191_p9), %v925_v55  ;;  %s217_s26 = scalar_lea.vmem (!%p191_p9), [#allocation2], %s682_s25  ;;  %s865_s12 = sshll.u32 (!%p191_p9), %s926_s11, 4  ;;  %s866_s12 = int_to_ptr.vmem [resolvable:$false] %s865_s12 }
  0x11   : > { %v361_v56 = vld [vmem:[%s1188_s4 + $0x8] sm:$0xff] (!%p191_p9)  ;;  %v360_v57 = vld [vmem:[%s1188_s4] sm:$0xff] (!%p191_p9)  ;;  %v363_v62 = vld [vmem:[%s1188_s4 + $0x18] sm:$0xff] (!%p191_p9)  ;;  %s867_s13 = scalar_lea.vmem (!%p191_p9), %s866_s12, 2048 }
  0x12   : > { %v364_v16 = vld [vmem:[%s1188_s4 + $0x20] sm:$0xff] (!%p191_p9) }
  0x15   : > { %s219_s30 = scalar_select %p218_p10, %s980_s22, 1 }
  0x17   : > { %s708_s6 = sshll.u32 %s219_s30, 6  ;;  %s709_s30 = sshll.u32 %s980_s22, 10 }
  0x18   : > { %s222_s9 = scalar_lea.vmem %s1184_s0, %s708_s6  ;;  %s616_s6 = sshll.u32 %s217_s26, 4  ;;  %s1137_s6 = int_to_ptr.vmem [resolvable:$true] %s616_s6 }
  0x19   : > { %v1012_v0 = vld [vmem:[%s222_s9 + $0x10] sm:$0xff]  ;;  %v1014_v1 = vld [vmem:[%s222_s9] sm:$0xff]  ;;  %v1016_v2 = vld [vmem:[%s222_s9 + $0x18] sm:$0xff]  ;;  %s1143_s22 = scalar_lea.sflag [#allocation3], %s215_s23  ;;  %s861_s10 = scalar_lea.vmem %s1137_s6, 1024 }
  0x1a   : > { %v238_v3 = vsel %vm231_vm0, %v1012_v0, 0.0  ;;  %v232_v4 = vsel %vm231_vm0, %v1014_v1, 0.0  ;;  %v1022_v5 = vld [vmem:[%s222_s9 + $0x8] sm:$0xff]  ;;  %v241_v6 = vsel %vm231_vm0, %v1016_v2, 0.0  ;;  %v1030_v9 = vld [vmem:[%s222_s9 + $0x20] sm:$0xff]  ;;  %v1036_v12 = vld [vmem:[%s222_s9 + $0x38] sm:$0xff]  ;;  %p862_p11 = scmp.ne.s32.totalorder %s1137_s6, %s861_s10  ;;  %p868_p0 = scmp.lt.s32.totalorder %s1137_s6, %s866_s12 }
  0x1b   : > { %239 = vadd.xlane.f32.xlu1 %v238_v3  ;;  %233 = vadd.xlane.f32.xlu0 %v232_v4  ;;  %v235_v7 = vsel %vm231_vm0, %v1022_v5, 0.0  ;;  %v1028_v8 = vld [vmem:[%s222_s9 + $0x28] sm:$0xff]  ;;  %v244_v11 = vsel %vm231_vm0, %v1030_v9, 0.0  ;;  %v1038_v13 = vld [vmem:[%s222_s9 + $0x30] sm:$0xff]  ;;  %v253_v14 = vsel %vm231_vm0, %v1036_v12, 0.0  ;;  %s1135_s9 = scalar_lea.hbm %s1189_s5, %s709_s30  ;;  %p869_p1 = scmp.lt.s32.totalorder %s867_s13, %s861_s10 }
  0x1c   : > { %v247_v10 = vsel %vm231_vm0, %v1028_v8, 0.0  ;;  %v250_v15 = vsel %vm231_vm0, %v1038_v13, 0.0  ;;  %v362_v3 = vld [vmem:[%s1188_s4 + $0x10] sm:$0xff]  ;;  %p863_p12 = pnand %p862_p11, %p997_p5 }
  0x1d   : > { %p870_p2 = por %p869_p1, %p868_p0 }
  0x1e   : > { %p864_p13 = pneg %p863_p12 }
  0x1f   : > { %242 = vadd.xlane.f32.xlu1 %v241_v6  ;;  %236 = vadd.xlane.f32.xlu0 %v235_v7 }
  0x20   : > { %p871_p3 = pnand %p870_p2, %p864_p13 }
  0x23   : > { %248 = vadd.xlane.f32.xlu1 %v247_v10  ;;  %245 = vadd.xlane.f32.xlu0 %v244_v11 }
  0x27   : > { %254 = vadd.xlane.f32.xlu1 %v253_v14  ;;  %251 = vadd.xlane.f32.xlu0 %v250_v15  ;;  %v365_v14 = vld [vmem:[%s1188_s4 + $0x28] sm:$0xff] }
  0xa8   : > { %v240_v17 = vpop.xlane.xlu1 %239  ;;  %v234_v18 = vpop.xlane.xlu0 %233 }
  0xa9   : > { %v259_v21 = vmul.f32 0.015625, %v240_v17  ;;  %v257_v22 = vmul.f32 0.015625, %v234_v18 }
  0xac   : > { %v243_v19 = vpop.xlane.xlu1 %242  ;;  %v237_v20 = vpop.xlane.xlu0 %236 }
  0xad   : > { %v260_v23 = vmul.f32 0.015625, %v243_v19  ;;  %v258_v24 = vmul.f32 0.015625, %v237_v20 }
  0xaf   : > { %v765_v25 = vpack.c.bf16 %v258_v24, %v257_v22  ;;  %v769_v28 = vpack.c.bf16 %v260_v23, %v259_v21  ;;  %v366_v23 = vld [vmem:[%s1188_s4 + $0x30] sm:$0xff] }
  0xb0   : > { %v249_v26 = vpop.xlane.xlu1 %248  ;;  %v246_v27 = vpop.xlane.xlu0 %245 }
  0xb1   : > { %766 = vmatprep.subr.bf16.mxu0 %v765_v25  ;;  %v262_v29 = vmul.f32 0.015625, %v249_v26  ;;  %v261_v30 = vmul.f32 0.015625, %v246_v27  ;;  %v367_v27 = vld [vmem:[%s1188_s4 + $0x38] sm:$0xff] }
  0xb2   : > { %768 = vmatpush3.bf16.msra.mxu0 %v765_v25 }
  0xb3   : > { %770 = vmatprep.subr.bf16.mxu0 %v769_v28  ;;  %v773_v31 = vpack.c.bf16 %v262_v29, %v261_v30 }
  0xb4   : > { %v255_v32 = vpop.xlane.xlu1 %254  ;;  %v252_v33 = vpop.xlane.xlu0 %251 }
  0xb5   : > { %v264_v34 = vmul.f32 0.015625, %v255_v32  ;;  %v263_v35 = vmul.f32 0.015625, %v252_v33 }
  0xb6   : > { %772 = vmatpush3.bf16.msra.mxu0 %v769_v28 }
  0xb7   : > { %v777_v36 = vpack.c.bf16 %v264_v34, %v263_v35  ;;  %774 = vmatprep.subr.bf16.mxu0 %v773_v31 }
  0xba   : > { %776 = vmatpush3.bf16.msra.mxu0 %v773_v31 }
  0xbb   : > { %778 = vmatprep.subr.bf16.mxu0 %v777_v36 }
  0xbe   : > { %780 = vmatpush3.bf16.msra.mxu0 %v777_v36 }
  0xc1   : > { %747 = vmatmul.mubr.msk.f32.vlgmr.msra.gmra.mrb[0].mxu0 %vm231_vm0, %v266_v37 }
 0x194   : > { %v748_v41 = vpop.f32.mrb[0].mxu0 }
 0x195   : > { %v347_v42 = vadd.f32 %v748_v41, %v268_v39  ;;  %v341_v43 = vpop.f32.mrb[1].mxu0 }
 0x196   : > { %v342_v44 = vadd.f32 %v341_v43, %v267_v40 }
 0x197   : > { %v351_v45 = vmax.f32 %v347_v42, 0.0 }
 0x198   : > { %v350_v46 = vmax.f32 %v342_v44, 0.0 }
 0x19a   : > { %v781_v47 = vpack.c.bf16 %v351_v45, %v350_v46 }
 0x19c   : > { %782 = vmatprep.subr.bf16.mxu1 %v781_v47 }
 0x19d   : > { %784 = vmatpush3.bf16.msra.mxu1 %v781_v47 }
 0x1a0   : > { %754 = vmatmul.mubr.msk.f32.vlgmr.msra.gmra.mrb[0].mxu1 %vm368_vm1, %v353_v48 }
 0x1a1   : > { %756 = vmatprep.mubr.msk.f32.mxu1 %vm368_vm1, %v354_v49 }
 0x1a4   : > { %757 = vmatmul.mubr.msk.f32.gmra.mrb[2].mxu1 %vm368_vm1, %v355_v50 }
 0x1a5   : > { %759 = vmatprep.mubr.msk.f32.mxu1 %vm368_vm1, %v356_v51 }
 0x1a8   : > { %760 = vmatmul.mubr.msk.f32.gmra.mrb[4].mxu1 %vm368_vm1, %v357_v52 }
 0x1a9   : > { %762 = vmatprep.mubr.msk.f32.mxu1 %vm368_vm1, %v358_v53 }
 0x1ac   : > { %763 = vmatmul.mubr.msk.f32.gmra.mrb[6].mxu1 %vm368_vm1, %v359_v54 }
 0x273   : > { %v755_v58 = vpop.f32.mrb[0].mxu1 }
 0x274   : > { %v465_v59 = vadd.f32 %v755_v58, %v361_v56  ;;  %v459_v60 = vpop.f32.mrb[1].mxu1 }
 0x275   : > { %v460_v61 = vadd.f32 %v459_v60, %v360_v57 }
 0x276   : > { %v696_v63 = vmul.f32 -1.442695, %v465_v59 }
 0x277   : > { %v695_v4 = vmul.f32 -1.442695, %v460_v61  ;;  %v758_v6 = vpop.f32.mrb[2].mxu1 }
 0x278   : > { %829 = vpow2.f32 %v696_v63  ;;  %v475_v7 = vadd.f32 %v758_v6, %v363_v62  ;;  %v469_v10 = vpop.f32.mrb[3].mxu1 }
 0x279   : > { %831 = vpow2.f32 %v695_v4  ;;  %v470_v11 = vadd.f32 %v469_v10, %v362_v3 }
 0x27a   : > { %v698_v15 = vmul.f32 -1.442695, %v475_v7 }
 0x27b   : > { %v697_v17 = vmul.f32 -1.442695, %v470_v11  ;;  %v761_v18 = vpop.f32.mrb[4].mxu1 }
 0x27c   : > { %833 = vpow2.f32 %v698_v15  ;;  %v485_v19 = vadd.f32 %v761_v18, %v365_v14  ;;  %v479_v20 = vpop.f32.mrb[5].mxu1 }
 0x27d   : > { %835 = vpow2.f32 %v697_v17  ;;  %v480_v21 = vadd.f32 %v479_v20, %v364_v16 }
 0x27e   : > { %v700_v22 = vmul.f32 -1.442695, %v485_v19 }
 0x27f   : > { %v764_v24 = vpop.f32.mrb[6].mxu1  ;;  %v699_v25 = vmul.f32 -1.442695, %v480_v21 }
 0x280   : > { %837 = vpow2.f32 %v700_v22  ;;  %v489_v26 = vpop.f32.mrb[7].mxu1  ;;  %v495_v34 = vadd.f32 %v764_v24, %v367_v27 }
 0x281   : > { %v490_v28 = vadd.f32 %v489_v26, %v366_v23  ;;  %839 = vpow2.f32 %v699_v25 }
 0x282   : > { %v830_v29 = vpop.eup %829  ;;  %v702_v38 = vmul.f32 -1.442695, %v495_v34 }
 0x283   : > { %v832_v30 = vpop.eup %831  ;;  %v523_v31 = vadd.f32 1.0, %v830_v29  ;;  %v701_v32 = vmul.f32 -1.442695, %v490_v28 }
 0x284   : > { %v522_v33 = vadd.f32 1.0, %v832_v30 }
 0x285   : > { %841 = vrcp.f32 %v523_v31 }
 0x286   : > { %v834_v35 = vpop.eup %833  ;;  %843 = vrcp.f32 %v522_v33 }
 0x287   : > { %v836_v36 = vpop.eup %835  ;;  %v525_v37 = vadd.f32 1.0, %v834_v35  ;;  %845 = vpow2.f32 %v701_v32 }
 0x288   : > { %v524_v39 = vadd.f32 1.0, %v836_v36 }
 0x289   : > { %847 = vrcp.f32 %v525_v37 }
 0x28a   : > { %v838_v40 = vpop.eup %837  ;;  %849 = vpow2.f32 %v702_v38 }
 0x28b   : > { %v527_v41 = vadd.f32 1.0, %v838_v40  ;;  %851 = vrcp.f32 %v524_v39  ;;  %v840_v42 = vpop.eup %839 }
 0x28c   : > { %v526_v46 = vadd.f32 1.0, %v840_v42 }
 0x28d   : > { %853 = vrcp.f32 %v527_v41 }
 0x28e   : > { %855 = vrcp.f32 %v526_v46 }
 0x28f   : > { %v842_v43 = vpop.eup %841 }
 0x290   : > { %v844_v44 = vpop.eup %843  ;;  %553 = vperm.xlu1 %828, %v842_v43  }
 0x291   : > { %v846_v45 = vpop.eup %845  ;;  %548 = vperm.xlu0 %827, %v844_v44  }
 0x292   : > { %v528_v48 = vadd.f32 1.0, %v846_v45 }
 0x293   : > { %v848_v47 = vpop.eup %847 }
 0x294   : > { %563 = vperm.xlu1 %828, %v848_v47   ;;  %v850_v49 = vpop.eup %849  ;;  %857 = vrcp.f32 %v528_v48 }
 0x295   : > { %v852_v50 = vpop.eup %851  ;;  %v529_v52 = vadd.f32 1.0, %v850_v49 }
 0x297   : > { %v854_v51 = vpop.eup %853  ;;  %859 = vrcp.f32 %v529_v52 }
 0x298   : > { %558 = vperm.xlu1 %828, %v852_v50   ;;  %v856_v53 = vpop.eup %855 }
 0x29c   : > { %573 = vperm.xlu1 %828, %v854_v51  }
 0x29e   : > { %v858_v54 = vpop.eup %857 }
 0x2a0   : > { %568 = vperm.xlu1 %828, %v856_v53  }
 0x2a1   : > { %v860_v55 = vpop.eup %859 }
 0x2a4   : > { %578 = vperm.xlu1 %828, %v858_v54  }
 0x2a8   : > { %583 = vperm.xlu1 %828, %v860_v55  }
 0x30f   : > { %v554_v56 = vpop.permute.xlu1 %553 }
 0x310   : > { %v587_v57 = vmul.f32 %v554_v56, %v1022_v5  ;;  %v549_v58 = vpop.permute.xlu0 %548 }
 0x311   : > { %v586_v59 = vmul.f32 %v549_v58, %v1014_v1 }
 0x312   : > { %595 = vst.msk [vmem:[%s217_s26 + $0x8] sm:$0xff] %vm231_vm0, %v587_v57 }
 0x313   : > { %594 = vst.msk [vmem:[%s217_s26] sm:$0xff] %vm231_vm0, %v586_v59  ;;  %v564_v60 = vpop.permute.xlu1 %563 }
 0x314   : > { %v589_v61 = vmul.f32 %v564_v60, %v1016_v2 }
 0x316   : > { %597 = vst.msk [vmem:[%s217_s26 + $0x18] sm:$0xff] %vm231_vm0, %v589_v61 }
 0x317   : > { %v559_v62 = vpop.permute.xlu1 %558 }
 0x318   : > { %v588_v63 = vmul.f32 %v559_v62, %v1012_v0 }
 0x31a   : > { %596 = vst.msk [vmem:[%s217_s26 + $0x10] sm:$0xff] %vm231_vm0, %v588_v63 }
 0x31b   : > { %v574_v5 = vpop.permute.xlu1 %573 }
 0x31c   : > { %v591_v1 = vmul.f32 %v574_v5, %v1028_v8 }
 0x31e   : > { %599 = vst.msk [vmem:[%s217_s26 + $0x28] sm:$0xff] %vm231_vm0, %v591_v1 }
 0x31f   : > { %v569_v3 = vpop.permute.xlu1 %568 }
 0x320   : > { %v590_v4 = vmul.f32 %v569_v3, %v1030_v9 }
 0x322   : > { %598 = vst.msk [vmem:[%s217_s26 + $0x20] sm:$0xff] %vm231_vm0, %v590_v4 }
 0x323   : > { %v579_v2 = vpop.permute.xlu1 %578 }
 0x324   : > { %v592_v6 = vmul.f32 %v579_v2, %v1038_v13 }
 0x326   : > { %600 = vst.msk [vmem:[%s217_s26 + $0x30] sm:$0xff] %vm231_vm0, %v592_v6 }
 0x327   : > { %v584_v0 = vpop.permute.xlu1 %583 }
 0x328   : > { %v593_v8 = vmul.f32 %v584_v0, %v1036_v12 }
 0x32a   : > { %601 = vst.msk [vmem:[%s217_s26 + $0x38] sm:$0xff] %vm231_vm0, %v593_v8 }
 0x32b   : > { %874 = shalt.err (!%p871_p3)
}
 0x32c   : > { %s875_s14 = scalar_lea.hbm %s1135_s9, 1024  ;;  %s879_s17 = scalar_lea.hbm %s1189_s5, 2048 }
 0x32d   : > { %p876_p4 = scmp.ne.s32.totalorder %s1135_s9, %s875_s14  ;;  %p880_p9 = scmp.lt.u32.totalorder %s1135_s9, %s1189_s5 }
 0x32e   : > { %p881_p10 = scmp.lt.u32.totalorder %s879_s17, %s875_s14  ;;  %p883_p12 = scmp.lt.u32.totalorder %s875_s14, %s1135_s9 }
 0x32f   : > { %p877_p7 = pnand %p876_p4, %p997_p5 }
 0x330   : > { %p882_p11 = por %p881_p10, %p880_p9 }
 0x331   : > { %p878_p8 = pneg %p877_p7 }
 0x332   : > { %p884_p13 = por %p883_p12, %p882_p11 }
 0x334   : > { %p885_p0 = pnand %p884_p13, %p878_p8 }
 0x336   : > { %888 = shalt.err (!%p885_p0)
}
 0x337   : > { %s927_s26 = smov 128   ;;  %s928_s30 = smov 8  }
 0x338   : > { %785 = dma.vmem_to_hbm [thread:$0]  (%p997_p5), %s1137_s6, 1024, %s1135_s9, %s1143_s22, %s927_s26, %s927_s26, %s928_s30  }
 0x339 PF: > { %p791_p1 = scmp.ge.s32.totalorder %s923_s21, 2  ;;  %s631_s7 = sand.u32 1, %s911_s18  }
 0x33a   : > { %s632_s8 = scalar_lea.sflag [#allocation3], %s631_s7 }
 0x33b   : > { %p788_p2 = pnand %p791_p1, %p1001_p6 }
 0x33d   : > { %906 = dma.done.wait (!%p788_p2), %s632_s8, 1024  }
 0x33e   : > { %908 = vsyncadd (!%p788_p2), %s632_s8, 4294966272  ;;  %p15_p3 = scmp.ge.s32.totalorder %s984_s24, 4   ;;  %s1192_s18 = smov %s915_s19 }
 0x33f   : > { %s1193_s19 = smov %s919_s20  ;;  %s1194_s20 = smov %s995_s27 }
 0x340   : > { %s1195_s21 = smov %s984_s24  ;;  %17 = sbr.rel (!%p15_p3) target bundleno = 3 (0x3), region = 75 }
 0x347   :  { %637 = vsyncpa [#allocation3], 1 }
 0x348   :  { %639 = vsyncpa [#allocation3 + $0x1], 1 }

</bundles_post_ra>
